<compile_context>
chip_gen: v7x
topology: tpu7x:2x2x1
jax: 0.10.0
libtpu: 0.0.40
codegen_flags: <defaults>
</compile_context>

<pallas_src>
import functools

import jax
import jax.numpy as jnp
from jax.experimental import pallas as pl
from jax.experimental.pallas import tpu as pltpu

LANE = 128


def _ipow(v, k):
    """v**k for a small non-negative integer k via trace-time multiplies."""
    if k == 0:
        return jnp.ones_like(v)
    result = None
    base = v
    while k:
        if k & 1:
            result = base if result is None else result * base
        k >>= 1
        if k:
            base = base * base
    return result


def _focal_loss_kernel(x_ref, t_ref, o_ref, acc_ref, *, gamma, int_gamma,
                       binary_targets, full_rows, rem, tile_rows,
                       steps_per_core, num_tiles):
    c = pl.program_id(0)          # core-parallel axis
    i = pl.program_id(1)          # reduction axis (tiles per core)

    @pl.when(i == 0)
    def _():
        acc_ref[...] = jnp.zeros_like(acc_ref)

    x = x_ref[...].astype(jnp.float32)
    t = t_ref[...].astype(jnp.float32)

    # Stable BCE-with-logits; x + max(-x,0) folded into max(x,0):
    #   bce = max(x,0) - x*t + log1p(exp(-|x|))
    xt = x * t
    ex = jnp.exp(-jnp.abs(x))                        # EUP
    bce = jnp.maximum(x, 0.0) - xt + jnp.log1p(ex)   # EUP (log1p)

    # z = -x*(2t - 1) = x - 2*(x*t); modulating factor = sigmoid(z)**gamma.
    z = x - 2.0 * xt
    if binary_targets:
        ez = ex                    # |z| == |x| exactly when t in {0, 1}
    else:
        ez = jnp.exp(-jnp.abs(z))                    # EUP

    if int_gamma is not None:
        # sigmoid(z) = where(z<0, ez, 1) / (1 + ez); integer power = VPU muls.
        sig = jnp.where(z < 0.0, ez, 1.0) / (1.0 + ez)
        modfac = _ipow(sig, int_gamma)
    else:
        # General (non-integer) gamma: exact logsigmoid form of the module.
        modfac = jnp.exp((jnp.minimum(z, 0.0) - jnp.log1p(ez)) * gamma)

    loss = modfac * bce

    # Interior tiles accumulate unmasked; only the last real tile (ragged
    # tail / partial row-block) and the clamped duplicate overflow tile of
    # the last core pay for the mask math.
    tile_idx = c * steps_per_core + i
    is_interior = tile_idx < num_tiles - 1

    @pl.when(is_interior)
    def _():
        acc_ref[...] += loss

    @pl.when(jnp.logical_not(is_interior))
    def _():
        row = jax.lax.broadcasted_iota(jnp.int32, (tile_rows, LANE), 0)
        col = jax.lax.broadcasted_iota(jnp.int32, (tile_rows, LANE), 1)
        grow = tile_idx * tile_rows + row            # global row index
        # Per-row / per-col compare (no int32 flat-index overflow): rows
        # below `full_rows` are fully valid; row `full_rows` holds the ragged
        # tail of `rem` elements.  The clamped duplicate tile has
        # grow >= rows >= full_rows and is fully masked out by value.
        valid = (grow < full_rows) | ((grow == full_rows) & (col < rem))
        acc_ref[...] += jnp.where(valid, loss, 0.0)

    @pl.when(i == pl.num_programs(1) - 1)
    def _():
        o_ref[0, 0] = jnp.sum(acc_ref[...])


def _num_tensorcores():
    """TensorCores per JAX device: 2 on v4/v5p megacore and v7x, else 1."""
    try:
        dev = jax.devices()[0]
    except Exception:
        return 1
    if getattr(dev, "platform", "") != "tpu":
        return 1
    kind = str(getattr(dev, "device_kind", "")).lower()
    if "v4" in kind or "v5p" in kind or "7" in kind:
        return 2
    return 1


def focal_loss(x, target, gamma, *, tile_rows=1024, binary_targets=False):
    if x.shape != target.shape:
        raise ValueError(
            f"Target size ({target.shape}) must be the same as input size ({x.shape})"
        )
    n = int(x.size)
    full_rows, rem = divmod(n, LANE)
    rows = full_rows + (1 if rem else 0)

    if rem == 0:
        # Free, layout-preserving reshape into a lane-dense (rows, 128) slab.
        x2 = jnp.reshape(x, (rows, LANE))
        t2 = jnp.reshape(target, (rows, LANE))
    else:
        # TODO(synk): this fallback makes one extra HBM pass to pad the <128-
        # element ragged tail; only hit when numel % 128 != 0 (a copy-free
        # path would need unaligned/1-D block support).
        pad = rows * LANE - n
        x2 = jnp.pad(jnp.ravel(x), (0, pad)).reshape(rows, LANE)
        t2 = jnp.pad(jnp.ravel(target), (0, pad)).reshape(rows, LANE)

    if rows <= tile_rows:
        tr = rows                                  # single block == full array
    else:
        tr = max(8, (int(tile_rows) // 8) * 8)     # sublane-aligned tile

    num_tiles = pl.cdiv(rows, tr)
    num_cores = max(1, min(_num_tensorcores(), num_tiles))
    spc = pl.cdiv(num_tiles, num_cores)            # tiles per core

    def in_map(c, i):
        # Clamp so the (possibly empty) overflow step of the last core
        # re-reads a valid block; its contribution is masked in-kernel.
        return (jnp.minimum(c * spc + i, num_tiles - 1), 0)

    tile_spec = pl.BlockSpec((tr, LANE), in_map)

    gamma = float(gamma)
    int_gamma = None
    if abs(gamma - round(gamma)) < 1e-6 and 0.0 <= round(gamma) <= 16.0:
        int_gamma = int(round(gamma))

    kernel = functools.partial(
        _focal_loss_kernel, gamma=gamma, int_gamma=int_gamma,
        binary_targets=bool(binary_targets), full_rows=full_rows, rem=rem,
        tile_rows=tr, steps_per_core=spc, num_tiles=num_tiles)

    if int_gamma is not None:
        trans_per_elem = 2 if binary_targets else 3
    else:
        trans_per_elem = 4 if binary_targets else 5
    cost = pl.CostEstimate(
        flops=20 * n,
        transcendentals=trans_per_elem * n,
        bytes_accessed=int(x2.size) * x2.dtype.itemsize
        + int(t2.size) * t2.dtype.itemsize + 4 * num_cores)

    partials = pl.pallas_call(
        kernel,
        out_shape=jax.ShapeDtypeStruct((num_cores, 1), jnp.float32),
        grid_spec=pltpu.PrefetchScalarGridSpec(
            num_scalar_prefetch=0,
            grid=(num_cores, spc),
            in_specs=[tile_spec, tile_spec],
            out_specs=pl.BlockSpec((1, 1), lambda c, i: (c, 0),
                                   memory_space=pltpu.SMEM),
            scratch_shapes=[pltpu.VMEM((tr, LANE), jnp.float32)],
        ),
        compiler_params=pltpu.CompilerParams(
            dimension_semantics=("parallel", "arbitrary")),
        cost_estimate=cost,
    )(x2, t2)

    return jnp.sum(partials) / jnp.float32(n)


def focal_loss_ref(x, target, gamma):
    x = x.astype(jnp.float32)
    t = target.astype(jnp.float32)
    max_val = jnp.maximum(-x, 0.0)
    loss = x - x * t + max_val + jnp.log(jnp.exp(-max_val) + jnp.exp(-x - max_val))
    invprobs = jax.nn.log_sigmoid(-x * (t * 2.0 - 1.0))
    loss = jnp.exp(invprobs * gamma) * loss
    return jnp.mean(loss)


if __name__ == "__main__":
    gamma = 2.0  # deterministic module "parameter"

    key = jax.random.PRNGKey(0)
    k1, k2 = jax.random.split(key)

    # NCHW-shaped logits and binary targets (same shape), small sizes.
    x = jax.random.normal(k1, (2, 4, 16, 16), dtype=jnp.float32)
    target = (jax.random.uniform(k2, (2, 4, 16, 16)) > 0.5).astype(jnp.float32)

    out = jax.block_until_ready(focal_loss(x, target, gamma))
    ref = focal_loss_ref(x, target, gamma)
    assert jnp.allclose(out, ref, rtol=1e-5, atol=1e-5), (out, ref)

    # Element count NOT a multiple of 128 (exercises the tail-masking path).
    k3, k4 = jax.random.split(k2)
    x2 = jax.random.normal(k3, (2, 3, 5, 7), dtype=jnp.float32)
    t2 = (jax.random.uniform(k4, (2, 3, 5, 7)) > 0.5).astype(jnp.float32)
    out2 = jax.block_until_ready(focal_loss(x2, t2, gamma))
    ref2 = focal_loss_ref(x2, t2, gamma)
    assert jnp.allclose(out2, ref2, rtol=1e-5, atol=1e-5), (out2, ref2)

    # Binary-target fast path (2 heavy transcendentals/element); exact for
    # 0/1 targets, kept behind an explicit flag for soft-target semantics.
    out3 = jax.block_until_ready(focal_loss(x, target, gamma, binary_targets=True))
    assert jnp.allclose(out3, ref, rtol=1e-5, atol=1e-5), (out3, ref)

    # Non-integer gamma exercises the general logsigmoid path.
    out4 = jax.block_until_ready(focal_loss(x, target, 1.5))
    ref4 = focal_loss_ref(x, target, 1.5)
    assert jnp.allclose(out4, ref4, rtol=1e-5, atol=1e-5), (out4, ref4)

    print("KERNEL_OK")
</pallas_src>

<mosaic_0001>
module attributes {stable_mosaic.version = 11 : i64} {
  func.func @_focal_loss_kernel(%arg0: i32, %arg1: i32, %arg2: memref<16x128xf32, #tpu.memory_space<vmem>>, %arg3: memref<16x128xf32, #tpu.memory_space<vmem>>, %arg4: memref<1x1xf32, #tpu.memory_space<smem>>, %arg5: memref<16x128xf32, #tpu.memory_space<vmem>>) attributes {dimension_semantics = [#tpu.dimension_semantics<parallel>, #tpu.dimension_semantics<arbitrary>], iteration_bounds = array<i64: 1, 1>, scalar_prefetch = 0 : i64, scratch_operands = 1 : i64, tpu.core_type = #tpu.core_type<tc>, window_params = [{transform_indices = @transform_0, window_bounds = array<i64: 16, 128>}, {transform_indices = @transform_1, window_bounds = array<i64: 16, 128>}, {transform_indices = @transform_2, window_bounds = array<i64: 1, 1>}]} {
    %c0_i32 = arith.constant 0 : i32
    %0 = arith.cmpi eq, %arg1, %c0_i32 : i32
    %1 = arith.extui %0 : i1 to i32
    %c0_i32_0 = arith.constant 0 : i32
    %2 = arith.cmpi ne, %1, %c0_i32_0 : i32
    scf.if %2 {
      %cst_15 = arith.constant 0.000000e+00 : f32
      %42 = vector.broadcast %cst_15 : f32 to vector<16x128xf32>
      %c0_16 = arith.constant 0 : index
      %c0_17 = arith.constant 0 : index
      %43 = vector.load %arg5[%c0_16, %c0_17] : memref<16x128xf32, #tpu.memory_space<vmem>>, vector<16x128xf32>
      tpu.vector_store %arg5[%c0_16, %c0_17], %42 {strides = array<i32>} : memref<16x128xf32, #tpu.memory_space<vmem>>, vector<16x128xf32>,
    } else {
    }
    %c0 = arith.constant 0 : index
    %c0_1 = arith.constant 0 : index
    %3 = vector.load %arg2[%c0, %c0_1] : memref<16x128xf32, #tpu.memory_space<vmem>>, vector<16x128xf32>
    %c0_2 = arith.constant 0 : index
    %c0_3 = arith.constant 0 : index
    %4 = vector.load %arg3[%c0_2, %c0_3] : memref<16x128xf32, #tpu.memory_space<vmem>>, vector<16x128xf32>
    %5 = arith.mulf %3, %4 : vector<16x128xf32>
    %6 = math.absf %3 : vector<16x128xf32>
    %cst = arith.constant 0.000000e+00 : f32
    %7 = vector.broadcast %cst : f32 to vector<16x128xf32>
    %8 = arith.subf %7, %6 : vector<16x128xf32>
    %9 = math.exp %8 : vector<16x128xf32>
    %cst_4 = arith.constant 0.000000e+00 : f32
    %10 = vector.broadcast %cst_4 : f32 to vector<16x128xf32>
    %11 = arith.maximumf %3, %10 : vector<16x128xf32>
    %12 = arith.subf %11, %5 : vector<16x128xf32>
    %13 = math.log1p %9 : vector<16x128xf32>
    %14 = arith.addf %12, %13 : vector<16x128xf32>
    %cst_5 = arith.constant 2.000000e+00 : f32
    %15 = vector.broadcast %cst_5 : f32 to vector<16x128xf32>
    %16 = arith.mulf %15, %5 : vector<16x128xf32>
    %17 = arith.subf %3, %16 : vector<16x128xf32>
    %18 = math.absf %17 : vector<16x128xf32>
    %cst_6 = arith.constant 0.000000e+00 : f32
    %19 = vector.broadcast %cst_6 : f32 to vector<16x128xf32>
    %20 = arith.subf %19, %18 : vector<16x128xf32>
    %21 = math.exp %20 : vector<16x128xf32>
    %cst_7 = arith.constant 0.000000e+00 : f32
    %22 = vector.broadcast %cst_7 : f32 to vector<16x128xf32>
    %23 = arith.cmpf olt, %17, %22 : vector<16x128xf32>
    %cst_8 = arith.constant 1.000000e+00 : f32
    %24 = vector.broadcast %cst_8 : f32 to vector<16x128xf32>
    %25 = arith.select %23, %21, %24 : vector<16x128xi1>, vector<16x128xf32>
    %cst_9 = arith.constant 1.000000e+00 : f32
    %26 = vector.broadcast %cst_9 : f32 to vector<16x128xf32>
    %27 = arith.addf %26, %21 : vector<16x128xf32>
    %28 = arith.divf %25, %27 : vector<16x128xf32>
    %29 = arith.mulf %28, %28 : vector<16x128xf32>
    %30 = arith.mulf %29, %14 : vector<16x128xf32>
    %c1_i32 = arith.constant 1 : i32
    %31 = arith.muli %arg0, %c1_i32 : i32
    %32 = arith.addi %31, %arg1 : i32
    %c0_i32_10 = arith.constant 0 : i32
    %33 = arith.cmpi slt, %32, %c0_i32_10 : i32
    %34 = arith.extui %33 : i1 to i32
    %c0_i32_11 = arith.constant 0 : i32
    %35 = arith.cmpi ne, %34, %c0_i32_11 : i32
    scf.if %35 {
      %c0_15 = arith.constant 0 : index
      %c0_16 = arith.constant 0 : index
      %42 = vector.load %arg5[%c0_15, %c0_16] : memref<16x128xf32, #tpu.memory_space<vmem>>, vector<16x128xf32>
      %43 = arith.addf %42, %30 : vector<16x128xf32>
      %c0_17 = arith.constant 0 : index
      %c0_18 = arith.constant 0 : index
      %44 = vector.load %arg5[%c0_17, %c0_18] : memref<16x128xf32, #tpu.memory_space<vmem>>, vector<16x128xf32>
      tpu.vector_store %arg5[%c0_17, %c0_18], %43 {strides = array<i32>} : memref<16x128xf32, #tpu.memory_space<vmem>>, vector<16x128xf32>,
    } else {
    }
    %true = arith.constant true
    %36 = arith.xori %33, %true : i1
    %37 = arith.extui %36 : i1 to i32
    %c0_i32_12 = arith.constant 0 : i32
    %38 = arith.cmpi ne, %37, %c0_i32_12 : i32
    scf.if %38 {
      %42 = tpu.iota {dimensions = array<i32: 0>} : vector<16x128xi32>
      %43 = tpu.iota {dimensions = array<i32: 1>} : vector<16x128xi32>
      %c16_i32 = arith.constant 16 : i32
      %44 = arith.muli %32, %c16_i32 : i32
      %45 = vector.broadcast %44 : i32 to vector<16x128xi32>
      %46 = arith.addi %45, %42 : vector<16x128xi32>
      %c16_i32_15 = arith.constant 16 : i32
      %47 = vector.broadcast %c16_i32_15 : i32 to vector<16x128xi32>
      %48 = arith.cmpi slt, %46, %47 : vector<16x128xi32>
      %c16_i32_16 = arith.constant 16 : i32
      %49 = vector.broadcast %c16_i32_16 : i32 to vector<16x128xi32>
      %50 = arith.cmpi eq, %46, %49 : vector<16x128xi32>
      %c0_i32_17 = arith.constant 0 : i32
      %51 = vector.broadcast %c0_i32_17 : i32 to vector<16x128xi32>
      %52 = arith.cmpi slt, %43, %51 : vector<16x128xi32>
      %53 = arith.andi %50, %52 : vector<16x128xi1>
      %54 = arith.ori %48, %53 : vector<16x128xi1>
      %c0_18 = arith.constant 0 : index
      %c0_19 = arith.constant 0 : index
      %55 = vector.load %arg5[%c0_18, %c0_19] : memref<16x128xf32, #tpu.memory_space<vmem>>, vector<16x128xf32>
      %cst_20 = arith.constant 0.000000e+00 : f32
      %56 = vector.broadcast %cst_20 : f32 to vector<16x128xf32>
      %57 = arith.select %54, %30, %56 : vector<16x128xi1>, vector<16x128xf32>
      %58 = arith.addf %55, %57 : vector<16x128xf32>
      %c0_21 = arith.constant 0 : index
      %c0_22 = arith.constant 0 : index
      %59 = vector.load %arg5[%c0_21, %c0_22] : memref<16x128xf32, #tpu.memory_space<vmem>>, vector<16x128xf32>
      tpu.vector_store %arg5[%c0_21, %c0_22], %58 {strides = array<i32>} : memref<16x128xf32, #tpu.memory_space<vmem>>, vector<16x128xf32>,
    } else {
    }
    %c0_i32_13 = arith.constant 0 : i32
    %39 = arith.cmpi eq, %arg1, %c0_i32_13 : i32
    %40 = arith.extui %39 : i1 to i32
    %c0_i32_14 = arith.constant 0 : i32
    %41 = arith.cmpi ne, %40, %c0_i32_14 : i32
    scf.if %41 {
      %c0_15 = arith.constant 0 : index
      %c0_16 = arith.constant 0 : index
      %42 = vector.load %arg5[%c0_15, %c0_16] : memref<16x128xf32, #tpu.memory_space<vmem>>, vector<16x128xf32>
      %43 = vector.shape_cast %42 : vector<16x128xf32> to vector<1x16x128xf32>
      %cst_17 = arith.constant dense<0.000000e+00> : vector<1xf32>
      %44 = vector.multi_reduction <add>, %43, %cst_17 [1, 2] : vector<1x16x128xf32> to vector<1xf32>
      %45 = vector.shape_cast %44 : vector<1xf32> to vector<1x1x1xf32>
      %46 = vector.extract %45[0, 0, 0] : f32 from vector<1x1x1xf32>
      %c0_18 = arith.constant 0 : index
      %c0_19 = arith.constant 0 : index
      %47 = memref.load %arg4[%c0_18, %c0_19] : memref<1x1xf32, #tpu.memory_space<smem>>
      memref.store %46, %arg4[%c0_18, %c0_19] : memref<1x1xf32, #tpu.memory_space<smem>>
    } else {
    }
    return
  }
  func.func @transform_0(%arg0: i32, %arg1: i32) -> (i32, i32) {
    %c1_i32 = arith.constant 1 : i32
    %0 = arith.muli %arg0, %c1_i32 : i32
    %1 = arith.addi %0, %arg1 : i32
    %c0_i32 = arith.constant 0 : i32
    %2 = arith.minsi %1, %c0_i32 : i32
    %c0_i32_0 = arith.constant 0 : i32
    %c0_i32_1 = arith.constant 0 : i32
    return %2, %c0_i32_0 : i32, i32
  }
  func.func @transform_1(%arg0: i32, %arg1: i32) -> (i32, i32) {
    %c1_i32 = arith.constant 1 : i32
    %0 = arith.muli %arg0, %c1_i32 : i32
    %1 = arith.addi %0, %arg1 : i32
    %c0_i32 = arith.constant 0 : i32
    %2 = arith.minsi %1, %c0_i32 : i32
    %c0_i32_0 = arith.constant 0 : i32
    %c0_i32_1 = arith.constant 0 : i32
    return %2, %c0_i32_0 : i32, i32
  }
  func.func @transform_2(%arg0: i32, %arg1: i32) -> (i32, i32) {
    %c0_i32 = arith.constant 0 : i32
    %c0_i32_0 = arith.constant 0 : i32
    return %arg0, %c0_i32 : i32, i32
  }
}

</mosaic_0001>

<bundles_post_ra>
// kernel: tpu_custom_call.1
= control target key start
LH: loop header
LB: loop body
LE: loop exit
PB: predicated region body
PF: predicated region fallthrough
CT: control target
= control target key end

     0   :  { %7 = vsyncpa [#allocation4], 0  ;;  %s346_s0 = inlined_call_operand.hbm [shape: f32[16,128], index: 0, kind: input, shape index: {}]   ;;  %s347_s1 = inlined_call_operand.hbm [shape: f32[16,128], index: 1, kind: input, shape index: {}]   ;;  %s348_s2 = inlined_call_operand.hbm [shape: f32[1,1], index: 2, kind: output, shape index: {}]  }
   0x1   :  { %8 = vsyncpa [#allocation7], 0 }
   0x2   :  { %9 = vsyncpa [#allocation5], 0  ;;  %s290_s9 = smov [#allocation3]   ;;  %s230_s13 = scalar_lea.hbm %s346_s0, 256 }
   0x3   :  { %s21_s10 = sshll.u32 %s290_s9, 4  ;;  %p231_p0 = scmp.ne.s32.totalorder %s346_s0, %s230_s13  ;;  %s22_s10 = int_to_ptr.vmem [resolvable:$true] %s21_s10 }
   0x4   :  { %p234_p1 = scmp.lt.u32.totalorder %s230_s13, %s346_s0 }
   0x6   :  { %p236_p2 = pnand %p234_p1, %p231_p0 }
   0x8   :  { %239 = shalt.err (!%p236_p2)
}
   0x9   :  { %s240_s18 = scalar_lea.vmem %s22_s10, 256  ;;  %p245_p4 = scmp.lt.s32.totalorder %s22_s10, %s22_s10 }
   0xa   :  { %p241_p3 = scmp.ne.s32.totalorder %s22_s10, %s240_s18  ;;  %p246_p5 = scmp.lt.s32.totalorder %s240_s18, %s240_s18 }
   0xc   :  { %p247_p6 = por %p246_p5, %p245_p4 }
   0xe   :  { %p248_p7 = pnand %p247_p6, %p241_p3 }
  0x10   :  { %251 = shalt.err (!%p248_p7)
}
  0x11   :  { %s291_s19 = smov 128   ;;  %s292_s20 = smov 8  }
  0x12   :  { %27 = dma.hbm_to_vmem [thread:$0]  %s346_s0, 256, %s22_s10, [#allocation4], %s291_s19, %s291_s19, %s292_s20  }
  0x13   :  { %s293_s23 = smov [#allocation6]   ;;  %s252_s27 = scalar_lea.hbm %s347_s1, 256 }
  0x14   :  { %s39_s24 = sshll.u32 %s293_s23, 4  ;;  %p253_p8 = scmp.ne.s32.totalorder %s347_s1, %s252_s27  ;;  %s40_s24 = int_to_ptr.vmem [resolvable:$true] %s39_s24 }
  0x15   :  { %p256_p9 = scmp.lt.u32.totalorder %s252_s27, %s347_s1 }
  0x17   :  { %p258_p10 = pnand %p256_p9, %p253_p8 }
  0x19   :  { %261 = shalt.err (!%p258_p10)
}
  0x1a   :  { %s262_s4 = scalar_lea.vmem %s40_s24, 256  ;;  %p267_p12 = scmp.lt.s32.totalorder %s40_s24, %s40_s24 }
  0x1b   :  { %p263_p11 = scmp.ne.s32.totalorder %s40_s24, %s262_s4  ;;  %p268_p13 = scmp.lt.s32.totalorder %s262_s4, %s262_s4 }
  0x1d   :  { %p269_p0 = por %p268_p13, %p267_p12 }
  0x1f   :  { %p270_p1 = pnand %p269_p0, %p263_p11 }
  0x21   :  { %273 = shalt.err (!%p270_p1)
}
  0x22   :  { %45 = dma.hbm_to_vmem [thread:$0]  %s347_s1, 256, %s40_s24, [#allocation7], %s291_s19, %s291_s19, %s292_s20  }
  0x23   :  { %284 = dma.done.wait [#allocation4], 256  }
  0x24   :  { %285 = vsyncadd [#allocation4], 4294967040 }
  0x25   :  { %286 = dma.done.wait [#allocation7], 256  }
  0x26   :  { %287 = vsyncadd [#allocation7], 4294967040  ;;  %v66_v0 = vld [vmem:[#allocation3] sm:$0xff]  ;;  %v67_v1 = vld [vmem:[#allocation3 + $0x8] sm:$0xff]  ;;  %s274_s8 = scalar_lea.hbm %s348_s2, 16 }
  0x27   :  { %v68_v2 = vld [vmem:[#allocation6] sm:$0xff]  ;;  %v69_v3 = vld [vmem:[#allocation6 + $0x8] sm:$0xff]  ;;  %v72_v5 = vand.u32 2147483647, %v66_v0  ;;  %v73_v6 = vand.u32 2147483647, %v67_v1  ;;  %p275_p2 = scmp.ne.s32.totalorder %s348_s2, %s274_s8  ;;  %p278_p3 = scmp.lt.u32.totalorder %s274_s8, %s348_s2 }
  0x28   :  { %v70_v4 = vmul.f32 %v68_v2, %v66_v0  ;;  %v71_v7 = vmul.f32 %v69_v3, %v67_v1  ;;  %v80_v36 = vmax.f32 %v66_v0, 0.0  ;;  %v81_v38 = vmax.f32 %v67_v1, 0.0 }
  0x29   :  { %v74_v8 = vsub.f32 0.0, %v72_v5  ;;  %v75_v9 = vsub.f32 0.0, %v73_v6  ;;  %p280_p4 = pnand %p278_p3, %p275_p2 }
  0x2a   :  { %v104_v10 = vmul.f32 2.0, %v70_v4  ;;  %v105_v11 = vmul.f32 2.0, %v71_v7  ;;  %v82_v44 = vsub.f32 %v80_v36, %v70_v4  ;;  %v83_v45 = vsub.f32 %v81_v38, %v71_v7 }
  0x2b   :  { %v76_v12 = vmul.f32 1.442695, %v74_v8  ;;  %v78_v13 = vmul.f32 1.442695, %v75_v9 }
  0x2c   :  { %v106_v14 = vsub.f32 %v66_v0, %v104_v10  ;;  %v107_v15 = vsub.f32 %v67_v1, %v105_v11 }
  0x2d   :  { %214 = vpow2.f32 %v76_v12 }
  0x2e   :  { %v108_v16 = vand.u32 2147483647, %v106_v14  ;;  %216 = vpow2.f32 %v78_v13  ;;  %v109_v17 = vand.u32 2147483647, %v107_v15  ;;  %vm116_vm1 = vcmp.lt.f32.partialorder %v106_v14, 0.0 }
  0x2f   :  { %vm117_vm3 = vcmp.lt.f32.partialorder %v107_v15, 0.0 }
  0x30   :  { %v110_v18 = vsub.f32 0.0, %v108_v16  ;;  %v111_v19 = vsub.f32 0.0, %v109_v17 }
  0x32   :  { %v112_v20 = vmul.f32 1.442695, %v110_v18  ;;  %v114_v21 = vmul.f32 1.442695, %v111_v19 }
  0x34   :  { %218 = vpow2.f32 %v112_v20 }
  0x35   :  { %220 = vpow2.f32 %v114_v21 }
  0x37   :  { %v215_v22 = vpop.eup %214 }
  0x38   :  { %v217_v23 = vpop.eup %216  ;;  %v84_v24 = vadd.f32 1.0, %v215_v22  ;;  %v87_v26 = vmul.f32 -0.5, %v215_v22  ;;  %v90_v33 = vand.u32 2147483647, %v215_v22 }
  0x39   :  { %v93_v25 = vadd.f32 1.0, %v217_v23  ;;  %v96_v28 = vmul.f32 -0.5, %v217_v23  ;;  %v99_v35 = vand.u32 2147483647, %v217_v23 }
  0x3a   :  { %222 = vlog2.f32 %v84_v24  ;;  %v88_v32 = vadd.f32 1.0, %v87_v26  ;;  %vm91_vm0 = vcmp.lt.f32.partialorder %v90_v33, 0.0004427343 }
  0x3b   :  { %224 = vlog2.f32 %v93_v25  ;;  %v97_v34 = vadd.f32 1.0, %v96_v28  ;;  %vm100_vm2 = vcmp.lt.f32.partialorder %v99_v35, 0.0004427343 }
  0x3c   :  { %v89_v39 = vmul.f32 %v215_v22, %v88_v32 }
  0x3d   :  { %v98_v42 = vmul.f32 %v217_v23, %v97_v34 }
  0x3e   :  { %v219_v27 = vpop.eup %218 }
  0x3f   :  { %v221_v29 = vpop.eup %220  ;;  %v120_v30 = vadd.f32 1.0, %v219_v27  ;;  %v118_v47 = vsel %vm116_vm1, %v219_v27, 1.0 }
  0x40   :  { %v121_v31 = vadd.f32 1.0, %v221_v29  ;;  %v119_v49 = vsel %vm117_vm3, %v221_v29, 1.0 }
  0x41   :  { %226 = vrcp.f32 %v120_v30 }
  0x42   :  { %228 = vrcp.f32 %v121_v31 }
  0x44   :  { %v223_v37 = vpop.eup %222 }
  0x45   :  { %v225_v40 = vpop.eup %224  ;;  %v86_v41 = vmul.f32 0.6931472, %v223_v37 }
  0x46   :  { %v95_v43 = vmul.f32 0.6931472, %v225_v40 }
  0x47   :  { %v92_v46 = vsel %vm91_vm0, %v89_v39, %v86_v41 }
  0x48   :  { %v101_v48 = vsel %vm100_vm2, %v98_v42, %v95_v43  ;;  %v102_v52 = vadd.f32 %v92_v46, %v82_v44 }
  0x49   :  { %v103_v54 = vadd.f32 %v101_v48, %v83_v45 }
  0x4b   :  { %v227_v50 = vpop.eup %226 }
  0x4c   :  { %v229_v51 = vpop.eup %228  ;;  %v123_v53 = vmul.f32 %v227_v50, %v118_v47 }
  0x4d   :  { %v125_v55 = vmul.f32 %v229_v51, %v119_v49 }
  0x4e   :  { %v126_v56 = vmul.f32 %v123_v53, %v123_v53 }
  0x4f   :  { %v127_v57 = vmul.f32 %v125_v55, %v125_v55 }
  0x50   :  { %v128_v58 = vmul.f32 %v126_v56, %v102_v52 }
  0x51   :  { %v129_v59 = vmul.f32 %v127_v57, %v103_v54 }
  0x53   :  { %v176_v60 = vadd.f32 %v129_v59, %v128_v58 }
  0x55   :  { %177 = vadd.xlane.f32.xlu0 %v176_v60 }
  0xe2   :  { %v178_v61 = vpop.xlane.xlu0 %177 }
  0xe3   :  { %v179_v62 = vrot.slane %v178_v61, 4 }
  0xe5   :  { %v180_v63 = vadd.f32 %v179_v62, %v178_v61 }
  0xe7   :  { %v181_v0 = vrot.slane %v180_v63, 2 }
  0xe9   :  { %v182_v1 = vadd.f32 %v181_v0, %v180_v63 }
  0xeb   :  { %v183_v2 = vrot.slane %v182_v1, 1 }
  0xed   :  { %v184_v3 = vadd.f32 %v183_v2, %v182_v1 }
  0xef   :  { %207 = vpush %v184_v3 }
 0x120   :  { %s208_s1 = spop %207 }
 0x121   :  { %187 = sst [smem:[#allocation8]] %s208_s1 }
 0x122   :  { %283 = shalt.err (!%p280_p4)
}
 0x123   :  { %s294_s13 = smov [#allocation8]  }
 0x124   :  { %195 = dma.smem_to_hbm %s294_s13, 16, %s348_s2, [#allocation5]  }
 0x125   :  { %288 = dma.done.wait [#allocation5], 16  }
 0x126   :  { %289 = vsyncadd [#allocation5], 4294967280 }
 0x127   :  { %199 = sfence }
 0x128   :  { %200 = vsyncpa [#allocation4], 1 }
 0x129   :  { %201 = vsyncpa [#allocation7], 1 }
 0x12a   :  { %202 = vsyncpa [#allocation5], 1 }

</bundles_post_ra>
